<compile_context>
chip_gen: v7x
topology: tpu7x:2x2x1
jax: 0.10.0
libtpu: 0.0.40
codegen_flags: <defaults>
</compile_context>

<pallas_src>
import jax
import jax.numpy as jnp
import numpy as np
from jax.experimental import pallas as pl
from jax.experimental.pallas import tpu as pltpu


def _round_up(x, m):
    return (x + m - 1) // m * m


def _pad_to(x, rows, cols):
    pr, pc = rows - x.shape[0], cols - x.shape[1]
    if pr or pc:
        x = jnp.pad(x, ((0, pr), (0, pc)))
    return x


def _sage_kernel(feat2_ref, adj_ref, feat1_ref, w_self_ref, w_neigh_ref,
                 bias_ref, out_ref, nsum_acc, deg_acc):
    """One (dst_tile, src_tile) grid step of mean-aggregation GraphSAGE.

    Accumulates neighbor feature sums and in-degrees across the src-tile axis
    (grid axis 1, "arbitrary"); at the last src tile normalizes, projects and
    writes the whole lane-dense output tile once.
    """
    j = pl.program_id(1)

    @pl.when(j == 0)
    def _():
        nsum_acc[...] = jnp.zeros_like(nsum_acc)
        deg_acc[...] = jnp.zeros_like(deg_acc)

    adj = adj_ref[...]                                         # (tile_nd, tile_ns)
    # Neighbor-sum for this src tile: single wide MXU matmul (N = F_pad lanes).
    nsum_acc[...] += jnp.dot(adj, feat1_ref[...],
                             preferred_element_type=jnp.float32)
    # In-degree contribution of this src tile (XLU row reduce).
    deg_acc[...] += jnp.sum(adj, axis=1, keepdims=True)

    @pl.when(j == pl.num_programs(1) - 1)
    def _():
        # Deferred normalization on the small (tile_nd, 1) degree vector:
        # zero in-degree rows have nsum == 0, so max(deg, 1) keeps them at 0
        # (matches DGL fn.mean on zero-degree nodes).
        inv = 1.0 / jnp.maximum(deg_acc[...], 1.0)
        h_neigh = nsum_acc[...] * inv                          # (tile_nd, F_pad)
        out = (jnp.dot(feat2_ref[...], w_self_ref[...],
                       preferred_element_type=jnp.float32)
               + jnp.dot(h_neigh, w_neigh_ref[...],
                         preferred_element_type=jnp.float32)
               + bias_ref[...])
        # One unmasked, lane-dense store of the full (tile_nd, D_pad) tile.
        out_ref[...] = out.astype(out_ref.dtype)


def gcmc_graph_sage_forward(adj, feat1, feat2, w_self, w_neigh, bias,
                            *, tile_nd=256, tile_ns=512):
    """Pallas-backed SAGEConv('mean') forward on a dense bipartite adjacency.

    adj:     (num_dst, num_src) 0/1 mask, adj[v, u] = 1 iff edge u -> v.
    feat1:   (num_src, F) src features (module's learned feat1).
    feat2:   (num_dst, F) dst features (module's learned feat2).
    w_self:  (F, out_feats)  = SAGEConv.fc_self.weight.T
    w_neigh: (F, out_feats)  = SAGEConv.fc_neigh.weight.T
    bias:    (out_feats,)
    Returns (num_dst, out_feats).
    """
    nd, ns = adj.shape
    f = feat1.shape[1]
    d = w_self.shape[1]

    # Tile sizes: dst tile is sublane-aligned (mult of 8), src tile lane-aligned
    # (mult of 128); both capped so tiny inputs don't over-pad.  Defaults keep a
    # double-buffered adj tile << the v7x 64 MiB VMEM budget.
    tile_nd = min(tile_nd, _round_up(nd, 8))
    tile_ns = min(tile_ns, _round_up(ns, 128))
    nd_p = _round_up(nd, tile_nd)
    ns_p = _round_up(ns, tile_ns)
    # Lane-pad the tiny feature / output dims so matmuls and the final output
    # store are dense (padded W rows/cols are zero, so results are unchanged).
    f_p = _round_up(f, 128)
    d_p = _round_up(d, 128)

    f32 = jnp.float32
    adj_p = _pad_to(adj.astype(f32), nd_p, ns_p)
    feat1_p = _pad_to(feat1.astype(f32), ns_p, f_p)
    feat2_p = _pad_to(feat2.astype(f32), nd_p, f_p)
    w_self_p = _pad_to(w_self.astype(f32), f_p, d_p)
    w_neigh_p = _pad_to(w_neigh.astype(f32), f_p, d_p)
    bias_p = _pad_to(bias.astype(f32).reshape(1, d), 1, d_p)

    grid = (nd_p // tile_nd, ns_p // tile_ns)

    out = pl.pallas_call(
        _sage_kernel,
        out_shape=jax.ShapeDtypeStruct((nd_p, d_p), f32),
        grid=grid,
        in_specs=[
            pl.BlockSpec((tile_nd, f_p), lambda i, j: (i, 0)),      # feat2 (dst)
            pl.BlockSpec((tile_nd, tile_ns), lambda i, j: (i, j)),  # adj tile
            pl.BlockSpec((tile_ns, f_p), lambda i, j: (j, 0)),      # feat1 (src)
            pl.BlockSpec((f_p, d_p), lambda i, j: (0, 0)),          # W_self
            pl.BlockSpec((f_p, d_p), lambda i, j: (0, 0)),          # W_neigh
            pl.BlockSpec((1, d_p), lambda i, j: (0, 0)),            # bias
        ],
        out_specs=pl.BlockSpec((tile_nd, d_p), lambda i, j: (i, 0)),
        scratch_shapes=[
            pltpu.VMEM((tile_nd, f_p), f32),   # neighbor-sum accumulator
            pltpu.VMEM((tile_nd, 1), f32),     # in-degree accumulator
        ],
        compiler_params=pltpu.CompilerParams(
            # dst axis shards across TensorCores (v7x megacore); src axis is a
            # reduction with resident accumulators -> "arbitrary".
            dimension_semantics=("parallel", "arbitrary")),
    )(feat2_p, adj_p, feat1_p, w_self_p, w_neigh_p, bias_p)

    return out[:nd, :d]


def reference_forward(adj, feat1, feat2, w_self, w_neigh, bias):
    """Pure-JAX reference of DGL SAGEConv('mean') on a dense adjacency."""
    deg = jnp.sum(adj, axis=1, keepdims=True)
    h_neigh = (adj @ feat1) / jnp.maximum(deg, 1.0)   # zero in-degree -> 0
    return feat2 @ w_self + h_neigh @ w_neigh + bias.reshape(1, -1)


def _xavier_uniform(key, shape):
    fan_in, fan_out = shape[0], shape[1]
    bound = float(np.sqrt(6.0 / (fan_in + fan_out)))
    return jax.random.uniform(key, shape, jnp.float32, -bound, bound)


if __name__ == "__main__":
    # Module hyperparameters (small, consistent with GCMCGraphSage):
    #   in_feats = (num_src_nodes, num_dst_nodes) = (16, 16)
    #   learned embeddings feat1/feat2 of dim 10, SAGEConv(10, 8, 'mean')
    NUM_SRC, NUM_DST = 16, 16
    FEAT_DIM = 10
    OUT_FEATS = 8

    keys = jax.random.split(jax.random.PRNGKey(0), 10)

    feat1 = _xavier_uniform(keys[0], (NUM_SRC, FEAT_DIM))            # nn.Parameter feat1
    feat2 = _xavier_uniform(keys[1], (NUM_DST, FEAT_DIM))            # nn.Parameter feat2
    w_self = _xavier_uniform(keys[2], (FEAT_DIM, OUT_FEATS))         # SAGEConv.fc_self
    w_neigh = _xavier_uniform(keys[3], (FEAT_DIM, OUT_FEATS))        # SAGEConv.fc_neigh
    bias = 0.1 * jax.random.normal(keys[4], (OUT_FEATS,), jnp.float32)

    # Deterministic random bipartite graph (some dst nodes may have 0 in-degree;
    # mean aggregation gives 0 for those, as in DGL).
    adj = (jax.random.uniform(keys[5], (NUM_DST, NUM_SRC)) < 0.3).astype(jnp.float32)

    out = gcmc_graph_sage_forward(adj, feat1, feat2, w_self, w_neigh, bias)
    out = jax.block_until_ready(out)
    ref = reference_forward(adj, feat1, feat2, w_self, w_neigh, bias)
    np.testing.assert_allclose(np.asarray(out), np.asarray(ref),
                               rtol=1e-4, atol=1e-5)
    assert out.shape == (NUM_DST, OUT_FEATS)

    # Multi-tile check: exercises the dst-parallel grid axis, src-tile
    # accumulation (pl.when init/finalize) and partial-tile padding.
    NS2, ND2 = 600, 200
    feat1b = _xavier_uniform(keys[6], (NS2, FEAT_DIM))
    feat2b = _xavier_uniform(keys[7], (ND2, FEAT_DIM))
    adjb = (jax.random.uniform(keys[8], (ND2, NS2)) < 0.05).astype(jnp.float32)
    outb = gcmc_graph_sage_forward(adjb, feat1b, feat2b, w_self, w_neigh, bias,
                                   tile_nd=64, tile_ns=256)
    outb = jax.block_until_ready(outb)
    refb = reference_forward(adjb, feat1b, feat2b, w_self, w_neigh, bias)
    np.testing.assert_allclose(np.asarray(outb), np.asarray(refb),
                               rtol=1e-4, atol=1e-5)
    assert outb.shape == (ND2, OUT_FEATS)

    print("KERNEL_OK")
</pallas_src>

<mosaic_0001>
module attributes {stable_mosaic.version = 11 : i64} {
  func.func @_sage_kernel(%arg0: i32, %arg1: i32, %arg2: memref<16x128xf32, #tpu.memory_space<vmem>>, %arg3: memref<16x128xf32, #tpu.memory_space<vmem>>, %arg4: memref<128x128xf32, #tpu.memory_space<vmem>>, %arg5: memref<128x128xf32, #tpu.memory_space<vmem>>, %arg6: memref<128x128xf32, #tpu.memory_space<vmem>>, %arg7: memref<1x128xf32, #tpu.memory_space<vmem>>, %arg8: memref<16x128xf32, #tpu.memory_space<vmem>>, %arg9: memref<16x128xf32, #tpu.memory_space<vmem>>, %arg10: memref<16x1xf32, #tpu.memory_space<vmem>>) attributes {dimension_semantics = [#tpu.dimension_semantics<parallel>, #tpu.dimension_semantics<arbitrary>], iteration_bounds = array<i64: 1, 1>, scalar_prefetch = 0 : i64, scratch_operands = 2 : i64, tpu.core_type = #tpu.core_type<tc>, window_params = [{transform_indices = @transform_0, window_bounds = array<i64: 16, 128>}, {transform_indices = @transform_1, window_bounds = array<i64: 16, 128>}, {transform_indices = @transform_2, window_bounds = array<i64: 128, 128>}, {pipeline_mode = #tpu.pipeline_mode<synchronous>, transform_indices = @transform_3, window_bounds = array<i64: 128, 128>}, {pipeline_mode = #tpu.pipeline_mode<synchronous>, transform_indices = @transform_4, window_bounds = array<i64: 128, 128>}, {pipeline_mode = #tpu.pipeline_mode<synchronous>, transform_indices = @transform_5, window_bounds = array<i64: 1, 128>}, {transform_indices = @transform_6, window_bounds = array<i64: 16, 128>}]} {
    %c0_i32 = arith.constant 0 : i32
    %0 = arith.cmpi eq, %arg1, %c0_i32 : i32
    %1 = arith.extui %0 : i1 to i32
    %c0_i32_0 = arith.constant 0 : i32
    %2 = arith.cmpi ne, %1, %c0_i32_0 : i32
    scf.if %2 {
      %cst_15 = arith.constant 0.000000e+00 : f32
      %17 = vector.broadcast %cst_15 : f32 to vector<16x128xf32>
      %c0_16 = arith.constant 0 : index
      %c0_17 = arith.constant 0 : index
      %18 = vector.load %arg9[%c0_16, %c0_17] : memref<16x128xf32, #tpu.memory_space<vmem>>, vector<16x128xf32>
      tpu.vector_store %arg9[%c0_16, %c0_17], %17 {strides = array<i32>} : memref<16x128xf32, #tpu.memory_space<vmem>>, vector<16x128xf32>,
      %cst_18 = arith.constant 0.000000e+00 : f32
      %19 = vector.broadcast %cst_18 : f32 to vector<16x1xf32>
      %c0_19 = arith.constant 0 : index
      %c0_20 = arith.constant 0 : index
      %20 = vector.load %arg10[%c0_19, %c0_20] : memref<16x1xf32, #tpu.memory_space<vmem>>, vector<16x1xf32>
      tpu.vector_store %arg10[%c0_19, %c0_20], %19 {strides = array<i32>} : memref<16x1xf32, #tpu.memory_space<vmem>>, vector<16x1xf32>,
    } else {
    }
    %c0 = arith.constant 0 : index
    %c0_1 = arith.constant 0 : index
    %3 = vector.load %arg3[%c0, %c0_1] : memref<16x128xf32, #tpu.memory_space<vmem>>, vector<16x128xf32>
    %c0_2 = arith.constant 0 : index
    %c0_3 = arith.constant 0 : index
    %4 = vector.load %arg9[%c0_2, %c0_3] : memref<16x128xf32, #tpu.memory_space<vmem>>, vector<16x128xf32>
    %c0_4 = arith.constant 0 : index
    %c0_5 = arith.constant 0 : index
    %5 = vector.load %arg4[%c0_4, %c0_5] : memref<128x128xf32, #tpu.memory_space<vmem>>, vector<128x128xf32>
    %cst = arith.constant dense<0.000000e+00> : vector<16x128xf32>
    %6 = tpu.matmul %3, %5, %cst {dimension_numbers = #tpu.dot_dimension_numbers<[1], [0], [0], [1], [0, 0, 1, 1], [], []>} : vector<16x128xf32>, vector<128x128xf32>, vector<16x128xf32> -> vector<16x128xf32>
    %7 = arith.addf %4, %6 : vector<16x128xf32>
    %c0_6 = arith.constant 0 : index
    %c0_7 = arith.constant 0 : index
    %8 = vector.load %arg9[%c0_6, %c0_7] : memref<16x128xf32, #tpu.memory_space<vmem>>, vector<16x128xf32>
    tpu.vector_store %arg9[%c0_6, %c0_7], %7 {strides = array<i32>} : memref<16x128xf32, #tpu.memory_space<vmem>>, vector<16x128xf32>,
    %c0_8 = arith.constant 0 : index
    %c0_9 = arith.constant 0 : index
    %9 = vector.load %arg10[%c0_8, %c0_9] : memref<16x1xf32, #tpu.memory_space<vmem>>, vector<16x1xf32>
    %cst_10 = arith.constant dense<0.000000e+00> : vector<16xf32>
    %10 = vector.multi_reduction <add>, %3, %cst_10 [1] : vector<16x128xf32> to vector<16xf32>
    %11 = vector.shape_cast %10 : vector<16xf32> to vector<16x1xf32>
    %12 = arith.addf %9, %11 : vector<16x1xf32>
    %c0_11 = arith.constant 0 : index
    %c0_12 = arith.constant 0 : index
    %13 = vector.load %arg10[%c0_11, %c0_12] : memref<16x1xf32, #tpu.memory_space<vmem>>, vector<16x1xf32>
    tpu.vector_store %arg10[%c0_11, %c0_12], %12 {strides = array<i32>} : memref<16x1xf32, #tpu.memory_space<vmem>>, vector<16x1xf32>,
    %c0_i32_13 = arith.constant 0 : i32
    %14 = arith.cmpi eq, %arg1, %c0_i32_13 : i32
    %15 = arith.extui %14 : i1 to i32
    %c0_i32_14 = arith.constant 0 : i32
    %16 = arith.cmpi ne, %15, %c0_i32_14 : i32
    scf.if %16 {
      %c0_15 = arith.constant 0 : index
      %c0_16 = arith.constant 0 : index
      %17 = vector.load %arg10[%c0_15, %c0_16] : memref<16x1xf32, #tpu.memory_space<vmem>>, vector<16x1xf32>
      %cst_17 = arith.constant 1.000000e+00 : f32
      %18 = vector.broadcast %cst_17 : f32 to vector<16x1xf32>
      %19 = arith.maximumf %17, %18 : vector<16x1xf32>
      %cst_18 = arith.constant 1.000000e+00 : f32
      %20 = vector.broadcast %cst_18 : f32 to vector<16x1xf32>
      %21 = arith.divf %20, %19 : vector<16x1xf32>
      %c0_19 = arith.constant 0 : index
      %c0_20 = arith.constant 0 : index
      %22 = vector.load %arg9[%c0_19, %c0_20] : memref<16x128xf32, #tpu.memory_space<vmem>>, vector<16x128xf32>
      %23 = vector.broadcast %21 : vector<16x1xf32> to vector<16x128xf32>
      %24 = arith.mulf %22, %23 : vector<16x128xf32>
      %c0_21 = arith.constant 0 : index
      %c0_22 = arith.constant 0 : index
      %25 = vector.load %arg2[%c0_21, %c0_22] : memref<16x128xf32, #tpu.memory_space<vmem>>, vector<16x128xf32>
      %c0_23 = arith.constant 0 : index
      %c0_24 = arith.constant 0 : index
      %26 = vector.load %arg5[%c0_23, %c0_24] : memref<128x128xf32, #tpu.memory_space<vmem>>, vector<128x128xf32>
      %cst_25 = arith.constant dense<0.000000e+00> : vector<16x128xf32>
      %27 = tpu.matmul %25, %26, %cst_25 {dimension_numbers = #tpu.dot_dimension_numbers<[1], [0], [0], [1], [0, 0, 1, 1], [], []>} : vector<16x128xf32>, vector<128x128xf32>, vector<16x128xf32> -> vector<16x128xf32>
      %c0_26 = arith.constant 0 : index
      %c0_27 = arith.constant 0 : index
      %28 = vector.load %arg6[%c0_26, %c0_27] : memref<128x128xf32, #tpu.memory_space<vmem>>, vector<128x128xf32>
      %cst_28 = arith.constant dense<0.000000e+00> : vector<16x128xf32>
      %29 = tpu.matmul %24, %28, %cst_28 {dimension_numbers = #tpu.dot_dimension_numbers<[1], [0], [0], [1], [0, 0, 1, 1], [], []>} : vector<16x128xf32>, vector<128x128xf32>, vector<16x128xf32> -> vector<16x128xf32>
      %30 = arith.addf %27, %29 : vector<16x128xf32>
      %c0_29 = arith.constant 0 : index
      %c0_30 = arith.constant 0 : index
      %31 = vector.load %arg7[%c0_29, %c0_30] : memref<1x128xf32, #tpu.memory_space<vmem>>, vector<1x128xf32>
      %32 = vector.broadcast %31 : vector<1x128xf32> to vector<16x128xf32>
      %33 = arith.addf %30, %32 : vector<16x128xf32>
      %c0_31 = arith.constant 0 : index
      %c0_32 = arith.constant 0 : index
      %34 = vector.load %arg8[%c0_31, %c0_32] : memref<16x128xf32, #tpu.memory_space<vmem>>, vector<16x128xf32>
      tpu.vector_store %arg8[%c0_31, %c0_32], %33 {strides = array<i32>} : memref<16x128xf32, #tpu.memory_space<vmem>>, vector<16x128xf32>,
    } else {
    }
    return
  }
  func.func @transform_0(%arg0: i32, %arg1: i32) -> (i32, i32) {
    %c0_i32 = arith.constant 0 : i32
    %c0_i32_0 = arith.constant 0 : i32
    return %arg0, %c0_i32 : i32, i32
  }
  func.func @transform_1(%arg0: i32, %arg1: i32) -> (i32, i32) {
    %c0_i32 = arith.constant 0 : i32
    return %arg0, %arg1 : i32, i32
  }
  func.func @transform_2(%arg0: i32, %arg1: i32) -> (i32, i32) {
    %c0_i32 = arith.constant 0 : i32
    %c0_i32_0 = arith.constant 0 : i32
    return %arg1, %c0_i32 : i32, i32
  }
  func.func @transform_3(%arg0: i32, %arg1: i32) -> (i32, i32) {
    %c0_i32 = arith.constant 0 : i32
    %c0_i32_0 = arith.constant 0 : i32
    %c0_i32_1 = arith.constant 0 : i32
    return %c0_i32, %c0_i32_0 : i32, i32
  }
  func.func @transform_4(%arg0: i32, %arg1: i32) -> (i32, i32) {
    %c0_i32 = arith.constant 0 : i32
    %c0_i32_0 = arith.constant 0 : i32
    %c0_i32_1 = arith.constant 0 : i32
    return %c0_i32, %c0_i32_0 : i32, i32
  }
  func.func @transform_5(%arg0: i32, %arg1: i32) -> (i32, i32) {
    %c0_i32 = arith.constant 0 : i32
    %c0_i32_0 = arith.constant 0 : i32
    %c0_i32_1 = arith.constant 0 : i32
    return %c0_i32, %c0_i32_0 : i32, i32
  }
  func.func @transform_6(%arg0: i32, %arg1: i32) -> (i32, i32) {
    %c0_i32 = arith.constant 0 : i32
    %c0_i32_0 = arith.constant 0 : i32
    return %arg0, %c0_i32 : i32, i32
  }
}

</mosaic_0001>

<bundles_post_ra>
// kernel: tpu_custom_call.1
= control target key start
LH: loop header
LB: loop body
LE: loop exit
PB: predicated region body
PF: predicated region fallthrough
CT: control target
= control target key end

     0   :  { %11 = vsyncpa [#allocation5], 0  ;;  %s1020_s0 = inlined_call_operand.hbm [shape: f32[16,128], index: 0, kind: input, shape index: {}]   ;;  %s1021_s1 = inlined_call_operand.hbm [shape: f32[16,128], index: 1, kind: input, shape index: {}]   ;;  %s1022_s2 = inlined_call_operand.hbm [shape: f32[128,128], index: 2, kind: input, shape index: {}]   ;;  %s1023_s3 = inlined_call_operand.hbm [shape: f32[128,128], index: 3, kind: input, shape index: {}]   ;;  %s1024_s4 = inlined_call_operand.hbm [shape: f32[128,128], index: 4, kind: input, shape index: {}]   ;;  %s1025_s5 = inlined_call_operand.vmem [shape: f32[1,128], index: 5, kind: input, shape index: {}]   ;;  %s1026_s6 = inlined_call_operand.hbm [shape: f32[16,128], index: 6, kind: output, shape index: {}]  }
   0x1   :  { %12 = vsyncpa [#allocation8], 0 }
   0x2   :  { %13 = vsyncpa [#allocation11], 0 }
   0x3   :  { %14 = vsyncpa [#allocation6], 0  ;;  %s864_s21 = smov [#allocation7]   ;;  %s865_s23 = smov [#allocation10]  }
   0x4   :  { %s32_s22 = sshll.u32 %s864_s21, 4  ;;  %s56_s24 = sshll.u32 %s865_s23, 4  ;;  %s33_s22 = int_to_ptr.vmem [resolvable:$true] %s32_s22  ;;  %s909_s24 = int_to_ptr.vmem [resolvable:$true] %s56_s24 }
   0x5   :  { %s724_s27 = scalar_lea.hbm %s1021_s1, 256 }
   0x6   :  { %p725_p0 = scmp.ne.s32.totalorder %s1021_s1, %s724_s27  ;;  %p728_p1 = scmp.lt.u32.totalorder %s724_s27, %s1021_s1 }
   0x8   :  { %p730_p2 = pnand %p728_p1, %p725_p0 }
   0xa   :  { %733 = shalt.err (!%p730_p2)
}
   0xb   :  { %s734_s8 = scalar_lea.vmem %s33_s22, 256  ;;  %p739_p4 = scmp.lt.s32.totalorder %s33_s22, %s33_s22 }
   0xc   :  { %p735_p3 = scmp.ne.s32.totalorder %s33_s22, %s734_s8  ;;  %p740_p5 = scmp.lt.s32.totalorder %s734_s8, %s734_s8 }
   0xe   :  { %p741_p6 = por %p740_p5, %p739_p4 }
  0x10   :  { %p742_p7 = pnand %p741_p6, %p735_p3 }
  0x12   :  { %745 = shalt.err (!%p742_p7)
}
  0x13   :  { %s866_s9 = smov 128   ;;  %s867_s10 = smov 8  }
  0x14   :  { %38 = dma.hbm_to_vmem [thread:$0]  %s1021_s1, 256, %s33_s22, [#allocation8], %s866_s9, %s866_s9, %s867_s10  }
  0x15   :  { %s746_s15 = scalar_lea.hbm %s1023_s3, 2048 }
  0x16   :  { %p747_p8 = scmp.ne.s32.totalorder %s1023_s3, %s746_s15  ;;  %p750_p9 = scmp.lt.u32.totalorder %s746_s15, %s1023_s3 }
  0x18   :  { %p752_p10 = pnand %p750_p9, %p747_p8 }
  0x1a   :  { %755 = shalt.err (!%p752_p10)
}
  0x1b   :  { %s756_s20 = scalar_lea.vmem %s909_s24, 2048  ;;  %p761_p12 = scmp.lt.s32.totalorder %s909_s24, %s909_s24 }
  0x1c   :  { %p757_p11 = scmp.ne.s32.totalorder %s909_s24, %s756_s20  ;;  %p762_p13 = scmp.lt.s32.totalorder %s756_s20, %s756_s20 }
  0x1e   :  { %p763_p0 = por %p762_p13, %p761_p12 }
  0x20   :  { %p764_p1 = pnand %p763_p0, %p757_p11 }
  0x22   :  { %767 = shalt.err (!%p764_p1)
}
  0x23   :  { %62 = dma.hbm_to_vmem [thread:$0]  %s1023_s3, 2048, %s909_s24, [#allocation11], %s866_s9, %s866_s9, %s867_s10  }
  0x24   :  { %s868_s22 = smov [#allocation4]   ;;  %s869_s25 = smov [#allocation9]  }
  0x25   :  { %s20_s23 = sshll.u32 %s868_s22, 4  ;;  %s44_s26 = sshll.u32 %s869_s25, 4  ;;  %s21_s23 = int_to_ptr.vmem [resolvable:$true] %s20_s23  ;;  %s946_s26 = int_to_ptr.vmem [resolvable:$true] %s44_s26 }
  0x26   :  { %s768_s29 = scalar_lea.hbm %s1020_s0, 256 }
  0x27   :  { %p769_p2 = scmp.ne.s32.totalorder %s1020_s0, %s768_s29  ;;  %p772_p3 = scmp.lt.u32.totalorder %s768_s29, %s1020_s0 }
  0x29   :  { %p774_p4 = pnand %p772_p3, %p769_p2 }
  0x2b   :  { %777 = shalt.err (!%p774_p4)
}
  0x2c   :  { %s778_s3 = scalar_lea.vmem %s21_s23, 256  ;;  %p783_p6 = scmp.lt.s32.totalorder %s21_s23, %s21_s23 }
  0x2d   :  { %p779_p5 = scmp.ne.s32.totalorder %s21_s23, %s778_s3  ;;  %p784_p7 = scmp.lt.s32.totalorder %s778_s3, %s778_s3 }
  0x2f   :  { %p785_p8 = por %p784_p7, %p783_p6 }
  0x31   :  { %p786_p9 = pnand %p785_p8, %p779_p5 }
  0x33   :  { %789 = shalt.err (!%p786_p9)
}
  0x34   :  { %26 = dma.hbm_to_vmem [thread:$0]  %s1020_s0, 256, %s21_s23, [#allocation5], %s866_s9, %s866_s9, %s867_s10  }
  0x35   :  { %s790_s15 = scalar_lea.hbm %s1022_s2, 2048 }
  0x36   :  { %p791_p10 = scmp.ne.s32.totalorder %s1022_s2, %s790_s15  ;;  %p794_p11 = scmp.lt.u32.totalorder %s790_s15, %s1022_s2 }
  0x38   :  { %p796_p12 = pnand %p794_p11, %p791_p10 }
  0x3a   :  { %799 = shalt.err (!%p796_p12)
}
  0x3b   :  { %s800_s20 = scalar_lea.vmem %s946_s26, 2048  ;;  %p805_p0 = scmp.lt.s32.totalorder %s946_s26, %s946_s26 }
  0x3c   :  { %p801_p13 = scmp.ne.s32.totalorder %s946_s26, %s800_s20  ;;  %p806_p1 = scmp.lt.s32.totalorder %s800_s20, %s800_s20 }
  0x3e   :  { %p807_p2 = por %p806_p1, %p805_p0 }
  0x40   :  { %p808_p3 = pnand %p807_p2, %p801_p13 }
  0x42   :  { %811 = shalt.err (!%p808_p3)
}
  0x43   :  { %50 = dma.hbm_to_vmem [thread:$0]  %s1022_s2, 2048, %s946_s26, [#allocation8], %s866_s9, %s866_s9, %s867_s10  }
  0x44   :  { %s870_s21 = smov [#allocation12]   ;;  %s812_s27 = scalar_lea.hbm %s1024_s4, 2048 }
  0x45   :  { %s68_s22 = sshll.u32 %s870_s21, 4  ;;  %p813_p4 = scmp.ne.s32.totalorder %s1024_s4, %s812_s27  ;;  %s69_s22 = int_to_ptr.vmem [resolvable:$true] %s68_s22 }
  0x46   :  { %p816_p5 = scmp.lt.u32.totalorder %s812_s27, %s1024_s4 }
  0x48   :  { %p818_p6 = pnand %p816_p5, %p813_p4 }
  0x4a   :  { %821 = shalt.err (!%p818_p6)
}
  0x4b   :  { %s822_s8 = scalar_lea.vmem %s69_s22, 2048  ;;  %p827_p8 = scmp.lt.s32.totalorder %s69_s22, %s69_s22 }
  0x4c   :  { %p823_p7 = scmp.ne.s32.totalorder %s69_s22, %s822_s8  ;;  %p828_p9 = scmp.lt.s32.totalorder %s822_s8, %s822_s8 }
  0x4e   :  { %p829_p10 = por %p828_p9, %p827_p8 }
  0x50   :  { %p830_p11 = pnand %p829_p10, %p823_p7 }
  0x52   :  { %833 = shalt.err (!%p830_p11)
}
  0x53   :  { %74 = dma.hbm_to_vmem [thread:$0]  %s1024_s4, 2048, %s69_s22, [#allocation11], %s866_s9, %s866_s9, %s867_s10  }
  0x54   :  { %856 = dma.done.wait [#allocation5], 256  }
  0x55   :  { %857 = vsyncadd [#allocation5], 4294967040 }
  0x56   :  { %858 = dma.done.wait [#allocation8], 2304  }
  0x57   :  { %859 = vsyncadd [#allocation8], 4294964992 }
  0x58   :  { %860 = dma.done.wait [#allocation11], 4096  }
  0x59   :  { %861 = vsyncadd [#allocation11], 4294963200  ;;  %vm98_vm0 = vcmask 7168   ;;  %v871_v0 = vmov 0.0   ;;  %v101_v1 = vld [vmem:[#allocation7] sm:$0xff]  ;;  %v105_v2 = vld [vmem:[#allocation9] sm:$0xff] }
  0x5a   :  { %99 = vst.msk [vmem:[#allocation3] sm:$0xff] %vm98_vm0, %v871_v0  ;;  %100 = vst.msk [vmem:[#allocation3 + $0x8] sm:$0xff] %vm98_vm0, %v871_v0  ;;  %202 = vadd.xlane.f32.xlu0 %v101_v1  ;;  %v106_v3 = vld [vmem:[#allocation9 + $0x8] sm:$0xff]  ;;  %v107_v4 = vld [vmem:[#allocation9 + $0x10] sm:$0xff]  ;;  %537 = vmatprep.mubr.f32.mxu0 %v101_v1  ;;  %v872_v24 = vmov 0   ;;  %s873_s3 = smov [#allocation13]  }
  0x5b   :  { %v108_v5 = vld [vmem:[#allocation9 + $0x18] sm:$0xff]  ;;  %v610_v7 = vpack.c.bf16 %v106_v3, %v105_v2  ;;  %v109_v9 = vld [vmem:[#allocation9 + $0x20] sm:$0xff]  ;;  %v110_v10 = vld [vmem:[#allocation9 + $0x28] sm:$0xff]  ;;  %718 = vset.pattern.permute.xlu1 %v872_v24  ;;  %719 = vset.pattern.permute.xlu0 %v872_v24  ;;  %s436_s24 = sshll.u32 %s873_s3, 4  ;;  %s437_s24 = int_to_ptr.vmem [resolvable:$true] %s436_s24 }
  0x5c   :  { %v102_v6 = vld [vmem:[#allocation7 + $0x8] sm:$0xff]  ;;  %v614_v8 = vpack.c.bf16 %v108_v5, %v107_v4  ;;  %v618_v11 = vpack.c.bf16 %v110_v10, %v109_v9  ;;  %v111_v12 = vld [vmem:[#allocation9 + $0x30] sm:$0xff]  ;;  %v113_v15 = vld [vmem:[#allocation9 + $0x40] sm:$0xff]  ;;  %s834_s12 = scalar_lea.vmem %s437_s24, 256  ;;  %p839_p13 = scmp.lt.s32.totalorder %s437_s24, %s437_s24 }
  0x5d   :  { %611 = vmatprep.subr.bf16.mxu0 %v610_v7  ;;  %v112_v13 = vld [vmem:[#allocation9 + $0x38] sm:$0xff]  ;;  %v114_v16 = vld [vmem:[#allocation9 + $0x48] sm:$0xff]  ;;  %v115_v18 = vld [vmem:[#allocation9 + $0x50] sm:$0xff]  ;;  %p835_p12 = scmp.ne.s32.totalorder %s437_s24, %s834_s12  ;;  %p840_p0 = scmp.lt.s32.totalorder %s834_s12, %s834_s12 }
  0x5e   :  { %204 = vadd.xlane.f32.xlu0 %v102_v6  ;;  %613 = vmatpush3.bf16.msra.mxu0 %v610_v7  ;;  %v622_v14 = vpack.c.bf16 %v112_v13, %v111_v12  ;;  %v626_v17 = vpack.c.bf16 %v114_v16, %v113_v15  ;;  %v116_v19 = vld [vmem:[#allocation9 + $0x58] sm:$0xff]  ;;  %v117_v21 = vld [vmem:[#allocation9 + $0x60] sm:$0xff]  ;;  %v118_v22 = vld [vmem:[#allocation9 + $0x68] sm:$0xff] }
  0x5f   :  { %615 = vmatprep.subr.bf16.mxu0 %v614_v8  ;;  %v630_v20 = vpack.c.bf16 %v116_v19, %v115_v18  ;;  %v634_v23 = vpack.c.bf16 %v118_v22, %v117_v21  ;;  %v119_v25 = vld [vmem:[#allocation9 + $0x70] sm:$0xff]  ;;  %v120_v26 = vld [vmem:[#allocation9 + $0x78] sm:$0xff]  ;;  %v254_v28 = vld [vmem:[#allocation12] sm:$0xff]  ;;  %p841_p1 = por %p840_p0, %p839_p13 }
  0x60   :  { %v638_v27 = vpack.c.bf16 %v120_v26, %v119_v25  ;;  %v255_v29 = vld [vmem:[#allocation12 + $0x8] sm:$0xff]  ;;  %v256_v30 = vld [vmem:[#allocation12 + $0x10] sm:$0xff]  ;;  %v257_v32 = vld [vmem:[#allocation12 + $0x18] sm:$0xff] }
  0x61   :  { %v642_v31 = vpack.c.bf16 %v255_v29, %v254_v28  ;;  %v646_v33 = vpack.c.bf16 %v257_v32, %v256_v30  ;;  %v258_v34 = vld [vmem:[#allocation12 + $0x20] sm:$0xff]  ;;  %v259_v35 = vld [vmem:[#allocation12 + $0x28] sm:$0xff]  ;;  %v260_v37 = vld [vmem:[#allocation12 + $0x30] sm:$0xff]  ;;  %p842_p2 = pnand %p841_p1, %p835_p12 }
  0x62   :  { %617 = vmatpush3.bf16.msra.mxu0 %v614_v8  ;;  %v650_v36 = vpack.c.bf16 %v259_v35, %v258_v34  ;;  %v261_v38 = vld [vmem:[#allocation12 + $0x38] sm:$0xff]  ;;  %v262_v40 = vld [vmem:[#allocation12 + $0x40] sm:$0xff]  ;;  %v263_v41 = vld [vmem:[#allocation12 + $0x48] sm:$0xff] }
  0x63   :  { %619 = vmatprep.subr.bf16.mxu0 %v618_v11  ;;  %643 = vmatprep.subr.bf16.mxu1 %v642_v31  ;;  %v654_v39 = vpack.c.bf16 %v261_v38, %v260_v37  ;;  %v658_v42 = vpack.c.bf16 %v263_v41, %v262_v40  ;;  %v264_v43 = vld [vmem:[#allocation12 + $0x50] sm:$0xff]  ;;  %v265_v44 = vld [vmem:[#allocation12 + $0x58] sm:$0xff]  ;;  %v266_v46 = vld [vmem:[#allocation12 + $0x60] sm:$0xff] }
  0x64   :  { %645 = vmatpush3.bf16.msra.mxu1 %v642_v31  ;;  %v662_v45 = vpack.c.bf16 %v265_v44, %v264_v43  ;;  %v267_v47 = vld [vmem:[#allocation12 + $0x68] sm:$0xff]  ;;  %v200_v49 = vld [vmem:[#allocation3] sm:$0xff]  ;;  %v201_v52 = vld [vmem:[#allocation3 + $0x8] sm:$0xff] }
  0x65   :  { %647 = vmatprep.subr.bf16.mxu1 %v646_v33  ;;  %v666_v48 = vpack.c.bf16 %v267_v47, %v266_v46  ;;  %v268_v59 = vld [vmem:[#allocation12 + $0x70] sm:$0xff]  ;;  %v269_v60 = vld [vmem:[#allocation12 + $0x78] sm:$0xff]  ;;  %v238_v63 = vld [vmem:[#allocation10] sm:$0xff] }
  0x66   :  { %621 = vmatpush3.bf16.msra.mxu0 %v618_v11  ;;  %v670_v62 = vpack.c.bf16 %v269_v60, %v268_v59  ;;  %v239_v0 = vld [vmem:[#allocation10 + $0x8] sm:$0xff]  ;;  %v240_v7 = vld [vmem:[#allocation10 + $0x10] sm:$0xff]  ;;  %v241_v8 = vld [vmem:[#allocation10 + $0x18] sm:$0xff] }
  0x67   :  { %623 = vmatprep.subr.bf16.mxu0 %v622_v14  ;;  %v674_v2 = vpack.c.bf16 %v239_v0, %v238_v63  ;;  %v678_v11 = vpack.c.bf16 %v241_v8, %v240_v7  ;;  %v236_v12 = vld [vmem:[#allocation4] sm:$0xff]  ;;  %v244_v16 = vld [vmem:[#allocation10 + $0x30] sm:$0xff]  ;;  %v251_v26 = vld [vmem:[#allocation10 + $0x68] sm:$0xff] }
  0x68   :  { %649 = vmatpush3.bf16.msra.mxu1 %v646_v33  ;;  %v242_v13 = vld [vmem:[#allocation10 + $0x20] sm:$0xff]  ;;  %v248_v22 = vld [vmem:[#allocation10 + $0x50] sm:$0xff]  ;;  %v253_v29 = vld [vmem:[#allocation10 + $0x78] sm:$0xff] }
  0x69   :  { %651 = vmatprep.subr.bf16.mxu1 %v650_v36  ;;  %v246_v19 = vld [vmem:[#allocation10 + $0x40] sm:$0xff]  ;;  %v252_v28 = vld [vmem:[#allocation10 + $0x70] sm:$0xff]  ;;  %v237_v31 = vld [vmem:[#allocation4 + $0x8] sm:$0xff] }
  0x6a   :  { %625 = vmatpush3.bf16.msra.mxu0 %v622_v14  ;;  %v243_v14 = vld [vmem:[#allocation10 + $0x28] sm:$0xff]  ;;  %v250_v25 = vld [vmem:[#allocation10 + $0x60] sm:$0xff]  ;;  %v702_v30 = vpack.c.bf16 %v253_v29, %v252_v28  ;;  %v450_v32 = vld [vmem:[%s1025_s5] ss:$0 sm:$0xff] }
  0x6b   :  { %627 = vmatprep.subr.bf16.mxu0 %v626_v17  ;;  %v682_v15 = vpack.c.bf16 %v243_v14, %v242_v13 }
  0x6c   :  { %653 = vmatpush3.bf16.msra.mxu1 %v650_v36 }
  0x6d   :  { %655 = vmatprep.subr.bf16.mxu1 %v654_v39 }
  0x6e   :  { %629 = vmatpush3.bf16.msra.mxu0 %v626_v17  ;;  %v245_v17 = vld [vmem:[#allocation10 + $0x38] sm:$0xff] }
  0x6f   :  { %631 = vmatprep.subr.bf16.mxu0 %v630_v20  ;;  %v686_v18 = vpack.c.bf16 %v245_v17, %v244_v16 }
  0x70   :  { %657 = vmatpush3.bf16.msra.mxu1 %v654_v39 }
  0x71   :  { %659 = vmatprep.subr.bf16.mxu1 %v658_v42 }
  0x72   :  { %633 = vmatpush3.bf16.msra.mxu0 %v630_v20  ;;  %v247_v20 = vld [vmem:[#allocation10 + $0x48] sm:$0xff] }
  0x73   :  { %635 = vmatprep.subr.bf16.mxu0 %v634_v23  ;;  %v690_v21 = vpack.c.bf16 %v247_v20, %v246_v19 }
  0x74   :  { %661 = vmatpush3.bf16.msra.mxu1 %v658_v42 }
  0x75   :  { %663 = vmatprep.subr.bf16.mxu1 %v662_v45 }
  0x76   :  { %637 = vmatpush3.bf16.msra.mxu0 %v634_v23  ;;  %v249_v23 = vld [vmem:[#allocation10 + $0x58] sm:$0xff] }
  0x77   :  { %639 = vmatprep.subr.bf16.mxu0 %v638_v27  ;;  %v694_v24 = vpack.c.bf16 %v249_v23, %v248_v22 }
  0x78   :  { %665 = vmatpush3.bf16.msra.mxu1 %v662_v45 }
  0x79   :  { %667 = vmatprep.subr.bf16.mxu1 %v666_v48 }
  0x7a   :  { %641 = vmatpush3.bf16.msra.mxu0 %v638_v27  ;;  %v698_v27 = vpack.c.bf16 %v251_v26, %v250_v25 }
  0x7c   :  { %669 = vmatpush3.bf16.msra.mxu1 %v666_v48 }
  0x7d   :  { %538 = vmatmul.mubr.f32.vlgmr.msra.gmra.mrb[0].mxu0 %v102_v6  ;;  %671 = vmatprep.subr.bf16.mxu1 %v670_v62 }
  0x80   :  { %673 = vmatpush3.bf16.msra.mxu1 %v670_v62 }
  0x81   :  { %675 = vmatprep.subr.bf16.mxu1 %v674_v2 }
  0xe7   :  { %v203_v50 = vpop.xlane.xlu0 %202 }
  0xe8   :  { %v206_v51 = vadd.f32 %v203_v50, %v200_v49 }
  0xea   :  { %209 = vst.msk [vmem:[#allocation3] sm:$0xff] %vm98_vm0, %v206_v51 }
  0xeb   :  { %v205_v53 = vpop.xlane.xlu0 %204 }
  0xec   :  { %v207_v54 = vadd.f32 %v205_v53, %v201_v52 }
  0xee   :  { %210 = vst.msk [vmem:[#allocation3 + $0x8] sm:$0xff] %vm98_vm0, %v207_v54 }
  0xf1   :  { %v214_v55 = vld [vmem:[#allocation3] sm:$0xff] }
  0xf2   :  { %v216_v56 = vmax.f32 %v214_v55, 1.0 }
  0xf4   :  { %720 = vrcp.f32 %v216_v56 }
  0xf5   :  { %v215_v57 = vld [vmem:[#allocation3 + $0x8] sm:$0xff] }
  0xf6   :  { %v217_v58 = vmax.f32 %v215_v57, 1.0 }
  0xf8   :  { %722 = vrcp.f32 %v217_v58 }
  0xfe   :  { %v721_v61 = vpop.eup %720 }
  0xff   :  { %226 = vperm.xlu1 %718, %v721_v61  }
 0x102   :  { %v723_v1 = vpop.eup %722 }
 0x103   :  { %231 = vperm.xlu1 %718, %v723_v1  }
 0x150   :  { %v539_v3 = vpop.f32.mrb[0].mxu0 }
 0x151   :  { %v187_v4 = vpop.f32.mrb[1].mxu0 }
 0x17e   :  { %v227_v5 = vpop.permute.xlu1 %226 }
 0x17f   :  { %v234_v6 = vmul.f32 %v227_v5, %v187_v4 }
 0x181   :  { %572 = vmatprep.mubr.f32.mxu1 %v234_v6 }
 0x182   :  { %v232_v9 = vpop.permute.xlu1 %231 }
 0x183   :  { %v235_v10 = vmul.f32 %v539_v3, %v232_v9 }
 0x185   :  { %573 = vmatmul.mubr.f32.vlgmr.msra.gmra.mrb[0].mxu1 %v235_v10 }
 0x186   :  { %677 = vmatpush3.bf16.msra.mxu1 %v674_v2  ;;  %607 = vmatprep.mubr.f32.mxu1 %v236_v12 }
 0x187   :  { %679 = vmatprep.subr.bf16.mxu1 %v678_v11 }
 0x18a   :  { %681 = vmatpush3.bf16.msra.mxu1 %v678_v11 }
 0x18b   :  { %683 = vmatprep.subr.bf16.mxu1 %v682_v15 }
 0x18e   :  { %685 = vmatpush3.bf16.msra.mxu1 %v682_v15 }
 0x18f   :  { %687 = vmatprep.subr.bf16.mxu1 %v686_v18 }
 0x192   :  { %689 = vmatpush3.bf16.msra.mxu1 %v686_v18 }
 0x193   :  { %691 = vmatprep.subr.bf16.mxu1 %v690_v21 }
 0x196   :  { %693 = vmatpush3.bf16.msra.mxu1 %v690_v21 }
 0x197   :  { %695 = vmatprep.subr.bf16.mxu1 %v694_v24 }
 0x19a   :  { %697 = vmatpush3.bf16.msra.mxu1 %v694_v24 }
 0x19b   :  { %699 = vmatprep.subr.bf16.mxu1 %v698_v27 }
 0x19e   :  { %701 = vmatpush3.bf16.msra.mxu1 %v698_v27 }
 0x19f   :  { %703 = vmatprep.subr.bf16.mxu1 %v702_v30 }
 0x1a2   :  { %705 = vmatpush3.bf16.msra.mxu1 %v702_v30 }
 0x1a5   :  { %608 = vmatmul.mubr.f32.vlgmr.msra.gmra.mrb[0].mxu1 %v237_v31 }
 0x278   :  { %v609_v33 = vpop.f32.mrb[0].mxu1 }
 0x279   :  { %v428_v34 = vadd.f32 %v609_v33, %v450_v32  ;;  %v411_v35 = vpop.f32.mrb[1].mxu1 }
 0x27a   :  { %v427_v36 = vadd.f32 %v450_v32, %v411_v35 }
 0x27b   :  { %430 = vst [vmem:[#allocation13 + $0x8] sm:$0xff] %v428_v34 }
 0x27c   :  { %429 = vst [vmem:[#allocation13] sm:$0xff] %v427_v36 }
 0x27d   :  { %845 = shalt.err (!%p842_p2)
}
 0x27e   :  { %s846_s5 = scalar_lea.hbm %s1026_s6, 256 }
 0x27f   :  { %p847_p3 = scmp.ne.s32.totalorder %s1026_s6, %s846_s5  ;;  %p850_p4 = scmp.lt.u32.totalorder %s846_s5, %s1026_s6 }
 0x281   :  { %p852_p5 = pnand %p850_p4, %p847_p3 }
 0x283   :  { %855 = shalt.err (!%p852_p5)
}
 0x284   :  { %442 = dma.vmem_to_hbm [thread:$0]  %s437_s24, 256, %s1026_s6, [#allocation6], %s866_s9, %s866_s9, %s867_s10  }
 0x285   :  { %862 = dma.done.wait [#allocation6], 256  }
 0x286   :  { %863 = vsyncadd [#allocation6], 4294967040 }
 0x287   :  { %446 = vsyncpa [#allocation5], 1 }
 0x288   :  { %447 = vsyncpa [#allocation8], 1 }
 0x289   :  { %448 = vsyncpa [#allocation11], 1 }
 0x28a   :  { %449 = vsyncpa [#allocation6], 1 }

</bundles_post_ra>
